<compile_context>
chip_gen: v7x
topology: tpu7x:2x2x1
jax: 0.10.0
libtpu: 0.0.40
codegen_flags: <defaults>
</compile_context>

<pallas_src>
import functools

import jax
import jax.numpy as jnp
import numpy as np
from jax.experimental import pallas as pl
from jax.experimental.pallas import tpu as pltpu

_LANES = 128
_TILE_ROWS = 2048  # 2048 x 128 f32 = 1 MiB per buffer; safe on v5e/v6e/v7x


def _clip_boxes_kernel(boxes_ref, out_ref, *, w, h):
    """Elementwise clamp on the VPU.

    boxes_ref / out_ref: [block_rows, 128] lane-dense tile in VMEM.
    Since 4 | 128, lane parity == coordinate parity:
      even lanes -> x coords -> clamp to w-1; odd lanes -> y coords -> h-1.
    """
    b = boxes_ref[...]
    b = jnp.maximum(b, jnp.zeros((), dtype=b.dtype))  # clamp(min=0)
    lane = jax.lax.broadcasted_iota(jnp.int32, b.shape, dimension=b.ndim - 1)
    cap = jnp.where(
        (lane & 1) == 0,
        jnp.asarray(w - 1, dtype=b.dtype),
        jnp.asarray(h - 1, dtype=b.dtype),
    )
    out_ref[...] = jnp.minimum(b, cap)  # per-coordinate clamp(max=...)


def _clip_lane_dense(flat, w, h):
    """Run the lane-dense kernel. flat: (total,) with total % 128 == 0, > 0."""
    total = flat.shape[0]
    rows = total // _LANES
    flat2d = flat.reshape(rows, _LANES)  # free under jit (row-major reshape)

    if rows <= _TILE_ROWS:
        block_rows = rows  # full array extent -> no (8,128) divisibility needed
        grid = (1,)
    else:
        block_rows = _TILE_ROWS  # divisible by 8; last block may be partial
        grid = (pl.cdiv(rows, _TILE_ROWS),)

    out2d = pl.pallas_call(
        functools.partial(_clip_boxes_kernel, w=w, h=h),
        out_shape=jax.ShapeDtypeStruct((rows, _LANES), flat.dtype),
        grid=grid,
        in_specs=[pl.BlockSpec((block_rows, _LANES), lambda i: (i, 0))],
        out_specs=pl.BlockSpec((block_rows, _LANES), lambda i: (i, 0)),
        compiler_params=pltpu.CompilerParams(
            dimension_semantics=("parallel",),
        ),
    )(flat2d)
    return out2d.reshape(total)


def _clip_tail_jnp(flat_tail, w, h):
    """Clamp a <128-element tail with plain jnp (starts at a 128-aligned,
    hence 4-aligned, flat offset, so element parity == coordinate parity)."""
    n = flat_tail.shape[0]
    dtype = flat_tail.dtype
    idx = jnp.arange(n)
    cap = jnp.where(
        (idx & 1) == 0,
        jnp.asarray(w - 1, dtype=dtype),
        jnp.asarray(h - 1, dtype=dtype),
    )
    return jnp.minimum(jnp.maximum(flat_tail, jnp.zeros((), dtype=dtype)), cap)


@jax.jit
def clip_boxes(batch_imgs, batch_boxes):
    """JAX/Pallas equivalent of ClipBoxes.forward (functional, returns boxes)."""
    h, w = batch_imgs.shape[2], batch_imgs.shape[3]
    assert batch_boxes.shape[-1] == 4, "last dim must be (x1, y1, x2, y2)"
    assert h >= 1 and w >= 1

    orig_shape = batch_boxes.shape
    total = int(np.prod(orig_shape))
    if total == 0:
        return batch_boxes

    flat = batch_boxes.reshape(total)  # row-major flatten, free under jit
    main = (total // _LANES) * _LANES

    if main == total:
        # Fast path: fully lane-aligned -> reshape only, no pad / no slice.
        out = _clip_lane_dense(flat, w, h)
    elif main == 0:
        # Tiny input (<128 elements): not worth a kernel launch.
        out = _clip_tail_jnp(flat, w, h)
    else:
        # Kernel on the 128-aligned prefix; jnp clamp on the short tail.
        head = _clip_lane_dense(flat[:main], w, h)
        tail = _clip_tail_jnp(flat[main:], w, h)
        out = jnp.concatenate([head, tail], axis=0)

    return out.reshape(orig_shape)


def _reference_clip_boxes(batch_imgs, batch_boxes):
    """Pure-numpy reference matching the PyTorch forward."""
    boxes = np.asarray(batch_boxes).copy()
    h, w = batch_imgs.shape[2], batch_imgs.shape[3]
    boxes = np.clip(boxes, 0, None)
    boxes[..., [0, 2]] = np.clip(boxes[..., [0, 2]], None, w - 1)
    boxes[..., [1, 3]] = np.clip(boxes[..., [1, 3]], None, h - 1)
    return boxes


if __name__ == "__main__":
    key = jax.random.PRNGKey(0)
    k_img, k_box = jax.random.split(key)

    B, C, H, W = 2, 4, 16, 16
    N = 64  # boxes per image -> total = 2*64*4 = 512 (lane-aligned fast path)

    batch_imgs = jax.random.normal(k_img, (B, C, H, W), dtype=jnp.float32)
    # Boxes span outside [0, W-1] / [0, H-1] so clamping is exercised.
    batch_boxes = jax.random.uniform(
        k_box, (B, N, 4), dtype=jnp.float32, minval=-10.0, maxval=30.0
    )

    out = jax.block_until_ready(clip_boxes(batch_imgs, batch_boxes))
    np.testing.assert_allclose(
        np.asarray(out), _reference_clip_boxes(batch_imgs, batch_boxes),
        rtol=0, atol=0,
    )

    # Extra correctness checks: tiny path (no kernel), prefix+tail path,
    # and multi-tile grid with a partial last block.
    for n_boxes in (8, 33, 40000):
        bb = jax.random.uniform(
            jax.random.PRNGKey(n_boxes), (B, n_boxes, 4),
            dtype=jnp.float32, minval=-10.0, maxval=30.0,
        )
        got = jax.block_until_ready(clip_boxes(batch_imgs, bb))
        np.testing.assert_allclose(
            np.asarray(got), _reference_clip_boxes(batch_imgs, bb),
            rtol=0, atol=0,
        )

    print("KERNEL_OK")
</pallas_src>

<mosaic_0001>
module attributes {stable_mosaic.version = 11 : i64} {
  func.func @_clip_boxes_kernel(%arg0: i32, %arg1: memref<4x128xf32, #tpu.memory_space<vmem>>, %arg2: memref<4x128xf32, #tpu.memory_space<vmem>>) attributes {dimension_semantics = [#tpu.dimension_semantics<parallel>], iteration_bounds = array<i64: 1>, scalar_prefetch = 0 : i64, scratch_operands = 0 : i64, tpu.core_type = #tpu.core_type<tc>, window_params = [{transform_indices = @transform_0, window_bounds = array<i64: 4, 128>}, {transform_indices = @transform_1, window_bounds = array<i64: 4, 128>}]} {
    %c0 = arith.constant 0 : index
    %c0_0 = arith.constant 0 : index
    %0 = vector.load %arg1[%c0, %c0_0] : memref<4x128xf32, #tpu.memory_space<vmem>>, vector<4x128xf32>
    %cst = arith.constant 0.000000e+00 : f32
    %1 = vector.broadcast %cst : f32 to vector<4x128xf32>
    %2 = arith.maximumf %0, %1 : vector<4x128xf32>
    %3 = tpu.iota {dimensions = array<i32: 1>} : vector<4x128xi32>
    %c1_i32 = arith.constant 1 : i32
    %4 = vector.broadcast %c1_i32 : i32 to vector<4x128xi32>
    %5 = arith.andi %3, %4 : vector<4x128xi32>
    %c0_i32 = arith.constant 0 : i32
    %6 = vector.broadcast %c0_i32 : i32 to vector<4x128xi32>
    %7 = arith.cmpi eq, %5, %6 : vector<4x128xi32>
    %cst_1 = arith.constant 1.500000e+01 : f32
    %cst_2 = arith.constant 1.500000e+01 : f32
    %8 = vector.broadcast %cst_1 : f32 to vector<4x128xf32>
    %9 = vector.broadcast %cst_2 : f32 to vector<4x128xf32>
    %10 = arith.select %7, %8, %9 : vector<4x128xi1>, vector<4x128xf32>
    %11 = arith.minimumf %2, %10 : vector<4x128xf32>
    %c0_3 = arith.constant 0 : index
    %c0_4 = arith.constant 0 : index
    %12 = vector.load %arg2[%c0_3, %c0_4] : memref<4x128xf32, #tpu.memory_space<vmem>>, vector<4x128xf32>
    tpu.vector_store %arg2[%c0_3, %c0_4], %11 {strides = array<i32>} : memref<4x128xf32, #tpu.memory_space<vmem>>, vector<4x128xf32>,
    return
  }
  func.func @transform_0(%arg0: i32) -> (i32, i32) {
    %c0_i32 = arith.constant 0 : i32
    %c0_i32_0 = arith.constant 0 : i32
    return %arg0, %c0_i32 : i32, i32
  }
  func.func @transform_1(%arg0: i32) -> (i32, i32) {
    %c0_i32 = arith.constant 0 : i32
    %c0_i32_0 = arith.constant 0 : i32
    return %arg0, %c0_i32 : i32, i32
  }
}

</mosaic_0001>

<bundles_post_ra>
// kernel: clip_boxes.1
= control target key start
LH: loop header
LB: loop body
LE: loop exit
PB: predicated region body
PF: predicated region fallthrough
CT: control target
= control target key end

     0   :  { %s32_s0 = inlined_call_operand.vmem [shape: f32[4,128], index: 0, kind: input, shape index: {}]   ;;  %s33_s1 = inlined_call_operand.vmem [shape: f32[4,128], index: 1, kind: output, shape index: {}]  }
   0x1   :  { %v8_v0 = vld [vmem:[%s32_s0] sm:$0xf] }
   0x2   :  { %v9_v1 = vmax.f32 %v8_v0, 0.0 }
   0x4   :  { %v10_v2 = vmin.f32 %v9_v1, 15.0 }
   0x6   :  { %11 = vst [vmem:[%s33_s1] sm:$0xf] %v10_v2 }

</bundles_post_ra>
